<compile_context>
chip_gen: v5e
topology: v5e:2x2
jax: 0.10.0
libtpu: 0.0.40
codegen_flags: <defaults>
</compile_context>

<pallas_src>
import jax
import jax.numpy as jnp
from jax.experimental import pallas as pl
from jax.experimental.pallas import tpu as pltpu


def _round_up(x, m):
    return (x + m - 1) // m * m


def _cdiv(a, b):
    return (a + b - 1) // b


def _head_kernel(x_ref, w1_ref, b1_ref, w2_ref, b2_ref, wc_ref, bc_ref, out_ref):
    """Fused per-N-tile: relu(x@W1+b1) -> relu(.@W2+b2) -> .@Wc+bc."""
    x = x_ref[...]  # bf16 [tn, d_in_p]

    h = jnp.dot(x, w1_ref[...], preferred_element_type=jnp.float32)
    h = jnp.maximum(h + b1_ref[...], 0.0).astype(jnp.bfloat16)

    h = jnp.dot(h, w2_ref[...], preferred_element_type=jnp.float32)
    h = jnp.maximum(h + b2_ref[...], 0.0).astype(jnp.bfloat16)

    logits = jnp.dot(h, wc_ref[...], preferred_element_type=jnp.float32) + bc_ref[...]
    out_ref[...] = logits.astype(out_ref.dtype)


def _vmem_capacity_bytes():
    try:
        cap = getattr(pltpu.get_tpu_info(), "vmem_capacity_bytes", None)
        if cap:
            return int(cap)
    except Exception:
        pass
    return 128 << 20  # v5e / v6e default


def _footprint_bytes(tn, d_in_p, f1_p, f2_p, c_out_p, w_bufs, out_itemsize):
    """Honest VMEM footprint: weights*bufs + biases + 2x x/out tiles + intermediates."""
    wts = 2 * w_bufs * (d_in_p * f1_p + f1_p * f2_p + f2_p * c_out_p)    # bf16 weights
    bias = 4 * w_bufs * (f1_p + f2_p + c_out_p)                          # f32 biases
    x_io = 2 * (2 * tn * d_in_p)                                         # bf16 x, 2 bufs
    o_io = 2 * (out_itemsize * tn * c_out_p)                             # out, 2 bufs
    inter = tn * (f1_p + f2_p) * (4 + 2) + 4 * tn * c_out_p              # f32+bf16 h, f32 logits
    return wts + bias + x_io + o_io + inter


def _select_tile(n, d_in_p, f1_p, f2_p, c_out_p, out_itemsize, vmem_cap, w_bufs):
    """Generation-aware, balanced ROI tile and VMEM budget."""
    if vmem_cap <= (64 << 20):            # v7x-class: 64 MiB per TensorCore
        budget, max_tile = 48 << 20, 256
        min_tiles = 2 if n >= 32 else 1   # keep both TensorCores busy
    else:                                 # v5e / v6e: 128 MiB
        budget, max_tile = 96 << 20, 512
        min_tiles = 1

    target = max_tile
    while True:
        num_tiles = max(min_tiles, _cdiv(n, target))
        tn = max(16, _round_up(_cdiv(n, num_tiles), 16))   # balanced: <16 pad rows/tile
        if _footprint_bytes(tn, d_in_p, f1_p, f2_p, c_out_p, w_bufs, out_itemsize) <= budget:
            break
        if target <= 16:
            # TODO(synk): for configs where even tn=16 + resident weights exceed the
            # budget (very large d_in on v7x), stream w1 K-chunks from HBM via
            # memory_space=pl.ANY + pltpu.emit_pipeline instead of keeping it resident.
            break
        target //= 2
    return tn, budget


def convfc_bbox_inscls_head(x, params, *, tile_n=None):
    """x: [N, C, H, W]; params = (w1, b1, w2, b2, wc, bc) with W in [in, out] layout.

    Returns (logits [N, final_out_channel] float32, None), matching the PyTorch forward.
    """
    n = x.shape[0]
    x_flat = x.reshape(n, -1)                    # == torch.flatten(1) on NCHW
    w1, b1, w2, b2, wc, bc = params

    d_in, f1 = w1.shape
    f2 = w2.shape[1]
    c_out = wc.shape[1]
    assert x_flat.shape[1] == d_in

    # Lane-dense feature dims (multiples of 128).
    d_in_p = _round_up(d_in, 128)
    f1_p = _round_up(f1, 128)
    f2_p = _round_up(f2, 128)
    c_out_p = _round_up(c_out, 128)

    out_dtype = jnp.bfloat16                     # halve writeback; upcast in wrapper
    out_itemsize = 2
    vmem_cap = _vmem_capacity_bytes()

    tn, budget = _select_tile(n, d_in_p, f1_p, f2_p, c_out_p, out_itemsize, vmem_cap, w_bufs=1)
    if tile_n is not None:
        tn = max(16, _round_up(min(tile_n, tn), 16))
    n_p = _round_up(n, tn)
    grid = (n_p // tn,)

    # bf16 cast always (halves DMA); pad only when shapes are not already aligned.
    def mat(a, rows, cols):
        a = a.astype(jnp.bfloat16)
        pr, pc = rows - a.shape[0], cols - a.shape[1]
        if pr or pc:
            a = jnp.pad(a, ((0, pr), (0, pc)))
        return a

    def vec(b, cols):
        b = b.reshape(1, -1).astype(jnp.float32)
        pc = cols - b.shape[1]
        if pc:
            b = jnp.pad(b, ((0, 0), (0, pc)))
        return b

    x_p = mat(x_flat, n_p, d_in_p)
    w1_p = mat(w1, d_in_p, f1_p)
    w2_p = mat(w2, f1_p, f2_p)
    wc_p = mat(wc, f2_p, c_out_p)
    b1_p = vec(b1, f1_p)
    b2_p = vec(b2, f2_p)
    bc_p = vec(bc, c_out_p)

    flops = 2 * n * (d_in * f1 + f1 * f2 + f2 * c_out)
    bytes_accessed = (
        2 * (int(x_p.size) + int(w1_p.size) + int(w2_p.size) + int(wc_p.size))
        + 4 * (int(b1_p.size) + int(b2_p.size) + int(bc_p.size))
        + out_itemsize * n_p * c_out_p
    )
    cost = pl.CostEstimate(flops=int(flops), transcendentals=0,
                           bytes_accessed=int(bytes_accessed))

    def build_and_run(w_bufs):
        if w_bufs == 1:
            def wspec(shape):
                return pl.BlockSpec(shape, lambda i: (0, 0), pipeline_mode=pl.Buffered(1))
        else:
            def wspec(shape):
                return pl.BlockSpec(shape, lambda i: (0, 0))

        vmem_bytes = _footprint_bytes(tn, d_in_p, f1_p, f2_p, c_out_p, w_bufs, out_itemsize)
        vmem_bytes = int(min(max(int(1.15 * vmem_bytes) + (2 << 20), 16 << 20), budget))

        return pl.pallas_call(
            _head_kernel,
            out_shape=jax.ShapeDtypeStruct((n_p, c_out_p), out_dtype),
            grid=grid,
            in_specs=[
                pl.BlockSpec((tn, d_in_p), lambda i: (i, 0)),   # x tile (streams)
                wspec((d_in_p, f1_p)),                          # w1 (resident)
                wspec((1, f1_p)),                               # b1
                wspec((f1_p, f2_p)),                            # w2 (resident)
                wspec((1, f2_p)),                               # b2
                wspec((f2_p, c_out_p)),                         # wc (resident)
                wspec((1, c_out_p)),                            # bc
            ],
            out_specs=pl.BlockSpec((tn, c_out_p), lambda i: (i, 0)),
            compiler_params=pltpu.CompilerParams(
                dimension_semantics=("parallel",),
                vmem_limit_bytes=vmem_bytes,
            ),
            cost_estimate=cost,
        )(x_p, w1_p, b1_p, w2_p, b2_p, wc_p, bc_p)

    try:
        out_p = build_and_run(w_bufs=1)
    except Exception:
        # TODO(synk): pipeline_mode=pl.Buffered(1) unsupported on this JAX build;
        # fall back to default double-buffered resident weights.
        out_p = build_and_run(w_bufs=2)

    logits = out_p[:n, :c_out].astype(jnp.float32)   # strip N/lane padding, f32 output
    return logits, None


if __name__ == "__main__":
    key = jax.random.PRNGKey(0)

    # Small synthetic shapes consistent with the module:
    #   roi_feat_size=7, in_channels=8 -> fc input = 8*7*7 = 392
    #   fc_out_channels=64, final_out_channel=32, num_rois (batch) = 8
    num_rois, in_channels, roi = 8, 8, 7
    fc_out, final_out = 64, 32
    d_in = in_channels * roi * roi

    kx, k1, k2, kc = jax.random.split(key, 4)
    x = jax.random.normal(kx, (num_rois, in_channels, roi, roi), jnp.float32)

    def xavier_uniform(k, fan_in, fan_out):
        bound = (6.0 / (fan_in + fan_out)) ** 0.5
        return jax.random.uniform(k, (fan_in, fan_out), jnp.float32, -bound, bound)

    # shared fcs: xavier_uniform weights, zero bias (as in init_weights)
    w1 = xavier_uniform(k1, d_in, fc_out)
    b1 = jnp.zeros((1, fc_out), jnp.float32)
    w2 = xavier_uniform(k2, fc_out, fc_out)
    b2 = jnp.zeros((1, fc_out), jnp.float32)
    # fc_cls: normal(0, 0.01) weights, zero bias
    wc = 0.01 * jax.random.normal(kc, (fc_out, final_out), jnp.float32)
    bc = jnp.zeros((1, final_out), jnp.float32)

    params = (w1, b1, w2, b2, wc, bc)
    logits, aux = convfc_bbox_inscls_head(x, params)
    jax.block_until_ready(logits)

    # Pure-JAX f32 reference of the forward semantics (kernel uses bf16 operands
    # with f32 accumulation and bf16 output, so use a loose tolerance).
    ref = x.reshape(num_rois, -1)
    ref = jnp.maximum(ref @ w1 + b1, 0.0)
    ref = jnp.maximum(ref @ w2 + b2, 0.0)
    ref = ref @ wc + bc

    assert logits.shape == (num_rois, final_out)
    assert aux is None
    assert jnp.allclose(logits, ref, atol=5e-2, rtol=5e-2), (
        "Pallas kernel mismatch vs reference"
    )

    print("KERNEL_OK")
</pallas_src>

<mosaic_0001>
module attributes {stable_mosaic.version = 11 : i64} {
  func.func @_head_kernel(%arg0: i32, %arg1: memref<16x512xbf16, #tpu.memory_space<vmem>>, %arg2: memref<512x128xbf16, #tpu.memory_space<vmem>>, %arg3: memref<1x128xf32, #tpu.memory_space<vmem>>, %arg4: memref<128x128xbf16, #tpu.memory_space<vmem>>, %arg5: memref<1x128xf32, #tpu.memory_space<vmem>>, %arg6: memref<128x128xbf16, #tpu.memory_space<vmem>>, %arg7: memref<1x128xf32, #tpu.memory_space<vmem>>, %arg8: memref<16x128xbf16, #tpu.memory_space<vmem>>) attributes {dimension_semantics = [#tpu.dimension_semantics<parallel>], iteration_bounds = array<i64: 1>, scalar_prefetch = 0 : i64, scratch_operands = 0 : i64, tpu.core_type = #tpu.core_type<tc>, window_params = [{transform_indices = @transform_0, window_bounds = array<i64: 16, 512>}, {pipeline_mode = #tpu.pipeline_mode<synchronous>, transform_indices = @transform_1, window_bounds = array<i64: 512, 128>}, {pipeline_mode = #tpu.pipeline_mode<synchronous>, transform_indices = @transform_2, window_bounds = array<i64: 1, 128>}, {pipeline_mode = #tpu.pipeline_mode<synchronous>, transform_indices = @transform_3, window_bounds = array<i64: 128, 128>}, {pipeline_mode = #tpu.pipeline_mode<synchronous>, transform_indices = @transform_4, window_bounds = array<i64: 1, 128>}, {pipeline_mode = #tpu.pipeline_mode<synchronous>, transform_indices = @transform_5, window_bounds = array<i64: 128, 128>}, {pipeline_mode = #tpu.pipeline_mode<synchronous>, transform_indices = @transform_6, window_bounds = array<i64: 1, 128>}, {transform_indices = @transform_7, window_bounds = array<i64: 16, 128>}]} {
    %c0 = arith.constant 0 : index
    %c0_0 = arith.constant 0 : index
    %0 = vector.load %arg1[%c0, %c0_0] : memref<16x512xbf16, #tpu.memory_space<vmem>>, vector<16x512xbf16>
    %c0_1 = arith.constant 0 : index
    %c0_2 = arith.constant 0 : index
    %1 = vector.load %arg2[%c0_1, %c0_2] : memref<512x128xbf16, #tpu.memory_space<vmem>>, vector<512x128xbf16>
    %cst = arith.constant dense<0.000000e+00> : vector<16x128xf32>
    %2 = tpu.matmul %0, %1, %cst {dimension_numbers = #tpu.dot_dimension_numbers<[1], [0], [0], [1], [0, 0, 1, 1], [], []>} : vector<16x512xbf16>, vector<512x128xbf16>, vector<16x128xf32> -> vector<16x128xf32>
    %c0_3 = arith.constant 0 : index
    %c0_4 = arith.constant 0 : index
    %3 = vector.load %arg3[%c0_3, %c0_4] : memref<1x128xf32, #tpu.memory_space<vmem>>, vector<1x128xf32>
    %4 = vector.broadcast %3 : vector<1x128xf32> to vector<16x128xf32>
    %5 = arith.addf %2, %4 : vector<16x128xf32>
    %cst_5 = arith.constant 0.000000e+00 : f32
    %6 = vector.broadcast %cst_5 : f32 to vector<16x128xf32>
    %7 = arith.maximumf %5, %6 : vector<16x128xf32>
    %8 = arith.truncf %7 : vector<16x128xf32> to vector<16x128xbf16>
    %c0_6 = arith.constant 0 : index
    %c0_7 = arith.constant 0 : index
    %9 = vector.load %arg4[%c0_6, %c0_7] : memref<128x128xbf16, #tpu.memory_space<vmem>>, vector<128x128xbf16>
    %cst_8 = arith.constant dense<0.000000e+00> : vector<16x128xf32>
    %10 = tpu.matmul %8, %9, %cst_8 {dimension_numbers = #tpu.dot_dimension_numbers<[1], [0], [0], [1], [0, 0, 1, 1], [], []>} : vector<16x128xbf16>, vector<128x128xbf16>, vector<16x128xf32> -> vector<16x128xf32>
    %c0_9 = arith.constant 0 : index
    %c0_10 = arith.constant 0 : index
    %11 = vector.load %arg5[%c0_9, %c0_10] : memref<1x128xf32, #tpu.memory_space<vmem>>, vector<1x128xf32>
    %12 = vector.broadcast %11 : vector<1x128xf32> to vector<16x128xf32>
    %13 = arith.addf %10, %12 : vector<16x128xf32>
    %cst_11 = arith.constant 0.000000e+00 : f32
    %14 = vector.broadcast %cst_11 : f32 to vector<16x128xf32>
    %15 = arith.maximumf %13, %14 : vector<16x128xf32>
    %16 = arith.truncf %15 : vector<16x128xf32> to vector<16x128xbf16>
    %c0_12 = arith.constant 0 : index
    %c0_13 = arith.constant 0 : index
    %17 = vector.load %arg6[%c0_12, %c0_13] : memref<128x128xbf16, #tpu.memory_space<vmem>>, vector<128x128xbf16>
    %cst_14 = arith.constant dense<0.000000e+00> : vector<16x128xf32>
    %18 = tpu.matmul %16, %17, %cst_14 {dimension_numbers = #tpu.dot_dimension_numbers<[1], [0], [0], [1], [0, 0, 1, 1], [], []>} : vector<16x128xbf16>, vector<128x128xbf16>, vector<16x128xf32> -> vector<16x128xf32>
    %c0_15 = arith.constant 0 : index
    %c0_16 = arith.constant 0 : index
    %19 = vector.load %arg7[%c0_15, %c0_16] : memref<1x128xf32, #tpu.memory_space<vmem>>, vector<1x128xf32>
    %20 = vector.broadcast %19 : vector<1x128xf32> to vector<16x128xf32>
    %21 = arith.addf %18, %20 : vector<16x128xf32>
    %22 = arith.truncf %21 : vector<16x128xf32> to vector<16x128xbf16>
    %c0_17 = arith.constant 0 : index
    %c0_18 = arith.constant 0 : index
    %23 = vector.load %arg8[%c0_17, %c0_18] : memref<16x128xbf16, #tpu.memory_space<vmem>>, vector<16x128xbf16>
    tpu.vector_store %arg8[%c0_17, %c0_18], %22 {strides = array<i32>} : memref<16x128xbf16, #tpu.memory_space<vmem>>, vector<16x128xbf16>,
    return
  }
  func.func @transform_0(%arg0: i32) -> (i32, i32) {
    %c0_i32 = arith.constant 0 : i32
    %c0_i32_0 = arith.constant 0 : i32
    return %arg0, %c0_i32 : i32, i32
  }
  func.func @transform_1(%arg0: i32) -> (i32, i32) {
    %c0_i32 = arith.constant 0 : i32
    %c0_i32_0 = arith.constant 0 : i32
    %c0_i32_1 = arith.constant 0 : i32
    return %c0_i32, %c0_i32_0 : i32, i32
  }
  func.func @transform_2(%arg0: i32) -> (i32, i32) {
    %c0_i32 = arith.constant 0 : i32
    %c0_i32_0 = arith.constant 0 : i32
    %c0_i32_1 = arith.constant 0 : i32
    return %c0_i32, %c0_i32_0 : i32, i32
  }
  func.func @transform_3(%arg0: i32) -> (i32, i32) {
    %c0_i32 = arith.constant 0 : i32
    %c0_i32_0 = arith.constant 0 : i32
    %c0_i32_1 = arith.constant 0 : i32
    return %c0_i32, %c0_i32_0 : i32, i32
  }
  func.func @transform_4(%arg0: i32) -> (i32, i32) {
    %c0_i32 = arith.constant 0 : i32
    %c0_i32_0 = arith.constant 0 : i32
    %c0_i32_1 = arith.constant 0 : i32
    return %c0_i32, %c0_i32_0 : i32, i32
  }
  func.func @transform_5(%arg0: i32) -> (i32, i32) {
    %c0_i32 = arith.constant 0 : i32
    %c0_i32_0 = arith.constant 0 : i32
    %c0_i32_1 = arith.constant 0 : i32
    return %c0_i32, %c0_i32_0 : i32, i32
  }
  func.func @transform_6(%arg0: i32) -> (i32, i32) {
    %c0_i32 = arith.constant 0 : i32
    %c0_i32_0 = arith.constant 0 : i32
    %c0_i32_1 = arith.constant 0 : i32
    return %c0_i32, %c0_i32_0 : i32, i32
  }
  func.func @transform_7(%arg0: i32) -> (i32, i32) {
    %c0_i32 = arith.constant 0 : i32
    %c0_i32_0 = arith.constant 0 : i32
    return %arg0, %c0_i32 : i32, i32
  }
}

module attributes {stable_mosaic.version = 11 : i64} {
  func.func @_head_kernel(%arg0: i32, %arg1: memref<16x512xbf16, #tpu.memory_space<vmem>>, %arg2: memref<512x128xbf16, #tpu.memory_space<vmem>>, %arg3: memref<1x128xf32, #tpu.memory_space<vmem>>, %arg4: memref<128x128xbf16, #tpu.memory_space<vmem>>, %arg5: memref<1x128xf32, #tpu.memory_space<vmem>>, %arg6: memref<128x128xbf16, #tpu.memory_space<vmem>>, %arg7: memref<1x128xf32, #tpu.memory_space<vmem>>, %arg8: memref<16x128xbf16, #tpu.memory_space<vmem>>) attributes {dimension_semantics = [#tpu.dimension_semantics<parallel>], iteration_bounds = array<i64: 1>, scalar_prefetch = 0 : i64, scratch_operands = 0 : i64, tpu.core_type = #tpu.core_type<tc>, window_params = [{transform_indices = @transform_0, window_bounds = array<i64: 16, 512>}, {pipeline_mode = #tpu.pipeline_mode<synchronous>, transform_indices = @transform_1, window_bounds = array<i64: 512, 128>}, {pipeline_mode = #tpu.pipeline_mode<synchronous>, transform_indices = @transform_2, window_bounds = array<i64: 1, 128>}, {pipeline_mode = #tpu.pipeline_mode<synchronous>, transform_indices = @transform_3, window_bounds = array<i64: 128, 128>}, {pipeline_mode = #tpu.pipeline_mode<synchronous>, transform_indices = @transform_4, window_bounds = array<i64: 1, 128>}, {pipeline_mode = #tpu.pipeline_mode<synchronous>, transform_indices = @transform_5, window_bounds = array<i64: 128, 128>}, {pipeline_mode = #tpu.pipeline_mode<synchronous>, transform_indices = @transform_6, window_bounds = array<i64: 1, 128>}, {transform_indices = @transform_7, window_bounds = array<i64: 16, 128>}]} {
    %c0 = arith.constant 0 : index
    %c0_0 = arith.constant 0 : index
    %0 = vector.load %arg1[%c0, %c0_0] : memref<16x512xbf16, #tpu.memory_space<vmem>>, vector<16x512xbf16>
    %c0_1 = arith.constant 0 : index
    %c0_2 = arith.constant 0 : index
    %1 = vector.load %arg2[%c0_1, %c0_2] : memref<512x128xbf16, #tpu.memory_space<vmem>>, vector<512x128xbf16>
    %cst = arith.constant dense<0.000000e+00> : vector<16x128xf32>
    %2 = tpu.matmul %0, %1, %cst {dimension_numbers = #tpu.dot_dimension_numbers<[1], [0], [0], [1], [0, 0, 1, 1], [], []>} : vector<16x512xbf16>, vector<512x128xbf16>, vector<16x128xf32> -> vector<16x128xf32>
    %c0_3 = arith.constant 0 : index
    %c0_4 = arith.constant 0 : index
    %3 = vector.load %arg3[%c0_3, %c0_4] : memref<1x128xf32, #tpu.memory_space<vmem>>, vector<1x128xf32>
    %4 = vector.broadcast %3 : vector<1x128xf32> to vector<16x128xf32>
    %5 = arith.addf %2, %4 : vector<16x128xf32>
    %cst_5 = arith.constant 0.000000e+00 : f32
    %6 = vector.broadcast %cst_5 : f32 to vector<16x128xf32>
    %7 = arith.maximumf %5, %6 : vector<16x128xf32>
    %8 = arith.truncf %7 : vector<16x128xf32> to vector<16x128xbf16>
    %c0_6 = arith.constant 0 : index
    %c0_7 = arith.constant 0 : index
    %9 = vector.load %arg4[%c0_6, %c0_7] : memref<128x128xbf16, #tpu.memory_space<vmem>>, vector<128x128xbf16>
    %cst_8 = arith.constant dense<0.000000e+00> : vector<16x128xf32>
    %10 = tpu.matmul %8, %9, %cst_8 {dimension_numbers = #tpu.dot_dimension_numbers<[1], [0], [0], [1], [0, 0, 1, 1], [], []>} : vector<16x128xbf16>, vector<128x128xbf16>, vector<16x128xf32> -> vector<16x128xf32>
    %c0_9 = arith.constant 0 : index
    %c0_10 = arith.constant 0 : index
    %11 = vector.load %arg5[%c0_9, %c0_10] : memref<1x128xf32, #tpu.memory_space<vmem>>, vector<1x128xf32>
    %12 = vector.broadcast %11 : vector<1x128xf32> to vector<16x128xf32>
    %13 = arith.addf %10, %12 : vector<16x128xf32>
    %cst_11 = arith.constant 0.000000e+00 : f32
    %14 = vector.broadcast %cst_11 : f32 to vector<16x128xf32>
    %15 = arith.maximumf %13, %14 : vector<16x128xf32>
    %16 = arith.truncf %15 : vector<16x128xf32> to vector<16x128xbf16>
    %c0_12 = arith.constant 0 : index
    %c0_13 = arith.constant 0 : index
    %17 = vector.load %arg6[%c0_12, %c0_13] : memref<128x128xbf16, #tpu.memory_space<vmem>>, vector<128x128xbf16>
    %cst_14 = arith.constant dense<0.000000e+00> : vector<16x128xf32>
    %18 = tpu.matmul %16, %17, %cst_14 {dimension_numbers = #tpu.dot_dimension_numbers<[1], [0], [0], [1], [0, 0, 1, 1], [], []>} : vector<16x128xbf16>, vector<128x128xbf16>, vector<16x128xf32> -> vector<16x128xf32>
    %c0_15 = arith.constant 0 : index
    %c0_16 = arith.constant 0 : index
    %19 = vector.load %arg7[%c0_15, %c0_16] : memref<1x128xf32, #tpu.memory_space<vmem>>, vector<1x128xf32>
    %20 = vector.broadcast %19 : vector<1x128xf32> to vector<16x128xf32>
    %21 = arith.addf %18, %20 : vector<16x128xf32>
    %22 = arith.truncf %21 : vector<16x128xf32> to vector<16x128xbf16>
    %c0_17 = arith.constant 0 : index
    %c0_18 = arith.constant 0 : index
    %23 = vector.load %arg8[%c0_17, %c0_18] : memref<16x128xbf16, #tpu.memory_space<vmem>>, vector<16x128xbf16>
    tpu.vector_store %arg8[%c0_17, %c0_18], %22 {strides = array<i32>} : memref<16x128xbf16, #tpu.memory_space<vmem>>, vector<16x128xbf16>,
    return
  }
  func.func @transform_0(%arg0: i32) -> (i32, i32) {
    %c0_i32 = arith.constant 0 : i32
    %c0_i32_0 = arith.constant 0 : i32
    return %arg0, %c0_i32 : i32, i32
  }
  func.func @transform_1(%arg0: i32) -> (i32, i32) {
    %c0_i32 = arith.constant 0 : i32
    %c0_i32_0 = arith.constant 0 : i32
    %c0_i32_1 = arith.constant 0 : i32
    return %c0_i32, %c0_i32_0 : i32, i32
  }
  func.func @transform_2(%arg0: i32) -> (i32, i32) {
    %c0_i32 = arith.constant 0 : i32
    %c0_i32_0 = arith.constant 0 : i32
    %c0_i32_1 = arith.constant 0 : i32
    return %c0_i32, %c0_i32_0 : i32, i32
  }
  func.func @transform_3(%arg0: i32) -> (i32, i32) {
    %c0_i32 = arith.constant 0 : i32
    %c0_i32_0 = arith.constant 0 : i32
    %c0_i32_1 = arith.constant 0 : i32
    return %c0_i32, %c0_i32_0 : i32, i32
  }
  func.func @transform_4(%arg0: i32) -> (i32, i32) {
    %c0_i32 = arith.constant 0 : i32
    %c0_i32_0 = arith.constant 0 : i32
    %c0_i32_1 = arith.constant 0 : i32
    return %c0_i32, %c0_i32_0 : i32, i32
  }
  func.func @transform_5(%arg0: i32) -> (i32, i32) {
    %c0_i32 = arith.constant 0 : i32
    %c0_i32_0 = arith.constant 0 : i32
    %c0_i32_1 = arith.constant 0 : i32
    return %c0_i32, %c0_i32_0 : i32, i32
  }
  func.func @transform_6(%arg0: i32) -> (i32, i32) {
    %c0_i32 = arith.constant 0 : i32
    %c0_i32_0 = arith.constant 0 : i32
    %c0_i32_1 = arith.constant 0 : i32
    return %c0_i32, %c0_i32_0 : i32, i32
  }
  func.func @transform_7(%arg0: i32) -> (i32, i32) {
    %c0_i32 = arith.constant 0 : i32
    %c0_i32_0 = arith.constant 0 : i32
    return %arg0, %c0_i32 : i32, i32
  }
}

</mosaic_0001>

<bundles_post_ra>
// kernel: tpu_custom_call.1
= control target key start
LH: loop header
LB: loop body
LE: loop exit
PB: predicated region body
PF: predicated region fallthrough
CT: control target
= control target key end

     0   :  { %12 = vsyncpa [#allocation3], 0  ;;  %s1115_s0 = inlined_call_operand.hbm [shape: bf16[16,512], index: 0, kind: input, shape index: {}]   ;;  %s1116_s1 = inlined_call_operand.hbm [shape: bf16[512,128], index: 1, kind: input, shape index: {}]   ;;  %s1117_s2 = inlined_call_operand.vmem [shape: f32[1,128], index: 2, kind: input, shape index: {}]   ;;  %s1118_s3 = inlined_call_operand.hbm [shape: bf16[128,128], index: 3, kind: input, shape index: {}]   ;;  %s1119_s4 = inlined_call_operand.vmem [shape: f32[1,128], index: 4, kind: input, shape index: {}]   ;;  %s1120_s5 = inlined_call_operand.hbm [shape: bf16[128,128], index: 5, kind: input, shape index: {}]   ;;  %s1121_s6 = inlined_call_operand.vmem [shape: f32[1,128], index: 6, kind: input, shape index: {}]   ;;  %s1122_s7 = inlined_call_operand.hbm [shape: bf16[16,128], index: 7, kind: output, shape index: {}]  }
   0x1   :  { %13 = vsyncpa [#allocation6], 0 }
   0x2   :  { %14 = vsyncpa [#allocation9], 0  ;;  %s33_s26 = sshll.u32 %s1116_s1, 4  ;;  %s34_s26 = int_to_ptr.hbm [resolvable:$true] %s33_s26 }
   0x3   :  { %15 = vsyncpa [#allocation4], 0  ;;  %s1030_s27 = smov [#allocation5]   ;;  %s20_s8 = sshll.u32 %s1115_s0, 4  ;;  %s21_s8 = int_to_ptr.hbm [resolvable:$true] %s20_s8 }
   0x4   :  { %s35_s28 = sshll.u32 %s1030_s27, 4  ;;  %s1031_s9 = smov 64   ;;  %s36_s28 = int_to_ptr.vmem [resolvable:$true] %s35_s28 }
   0x5   :  { %s1032_s10 = smov 4   ;;  %s1033_s11 = smov [#allocation2]  }
   0x6   :  { %41 = dma.hbm_to_vmem [thread:$0]  %s34_s26, 4096, %s36_s28, [#allocation6], %s1031_s9, %s1031_s9, %s1032_s10  }
   0x7   :  { %s22_s12 = sshll.u32 %s1033_s11, 4  ;;  %s1034_s1 = smov 256   ;;  %s23_s12 = int_to_ptr.vmem [resolvable:$true] %s22_s12 }
   0x8   :  { %s1035_s13 = smov 16   ;;  %s48_s16 = sshll.u32 %s1118_s3, 4  ;;  %s49_s16 = int_to_ptr.hbm [resolvable:$true] %s48_s16 }
   0x9   :  { %28 = dma.hbm_to_vmem [thread:$0]  %s21_s8, 512, %s23_s12, [#allocation3], %s1034_s1, %s1034_s1, %s1035_s13  }
   0xa   :  { %s1036_s17 = smov [#allocation7]   ;;  %s63_s20 = sshll.u32 %s1120_s5, 4  ;;  %s64_s20 = int_to_ptr.hbm [resolvable:$true] %s63_s20 }
   0xb   :  { %s50_s0 = sshll.u32 %s1036_s17, 4  ;;  %s1037_s21 = smov [#allocation8]   ;;  %s51_s0 = int_to_ptr.vmem [resolvable:$true] %s50_s0 }
   0xc   :  { %56 = dma.hbm_to_vmem [thread:$0]  %s49_s16, 1024, %s51_s0, [#allocation6], %s1031_s9, %s1031_s9, %s1032_s10  }
   0xd   :  { %s65_s22 = sshll.u32 %s1037_s21, 4  ;;  %s66_s22 = int_to_ptr.vmem [resolvable:$true] %s65_s22 }
   0xe   :  { %71 = dma.hbm_to_vmem [thread:$0]  %s64_s20, 1024, %s66_s22, [#allocation9], %s1031_s9, %s1031_s9, %s1032_s10  }
   0xf   :  { %1022 = dma.done.wait [#allocation3], 512  }
  0x10   :  { %1023 = vsyncadd [#allocation3], 4294966784 }
  0x11   :  { %1024 = dma.done.wait [#allocation6], 5120  }
  0x12   :  { %1025 = vsyncadd [#allocation6], 4294962176 }
  0x13   :  { %1026 = dma.done.wait [#allocation9], 1024  }
  0x14   :  { %1027 = vsyncadd [#allocation9], 4294966272  ;;  %v844_v0 = vld [vmem:[#allocation5 + $0x38] sm:$0xff]  ;;  %v843_v4 = vld [vmem:[#allocation5 + $0x30] sm:$0xff]  ;;  %s1038_s26 = smov [#allocation10]   ;;  %s610_s30 = sshll.u32 %s1122_s7, 4  ;;  %s611_s30 = int_to_ptr.hbm [resolvable:$true] %s610_s30 }
  0x15   :  { %v852_v1 = vld [vmem:[#allocation5 + $0x78] sm:$0xff]  ;;  %374 = vmatpush.bf16.msra.mxu0 %v844_v0  ;;  %v851_v5 = vld [vmem:[#allocation5 + $0x70] sm:$0xff]  ;;  %v842_v8 = vld [vmem:[#allocation5 + $0x28] sm:$0xff]  ;;  %s608_s27 = sshll.u32 %s1038_s26, 4  ;;  %s609_s27 = int_to_ptr.vmem [resolvable:$true] %s608_s27 }
  0x16   :  { %v860_v2 = vld [vmem:[#allocation5 + $0xb8] sm:$0xff]  ;;  %388 = vmatpush.bf16.msra.mxu1 %v852_v1  ;;  %v859_v6 = vld [vmem:[#allocation5 + $0xb0] sm:$0xff]  ;;  %v850_v9 = vld [vmem:[#allocation5 + $0x68] sm:$0xff] }
  0x17   :  { %v868_v3 = vld [vmem:[#allocation5 + $0xf8] sm:$0xff]  ;;  %402 = vmatpush.bf16.msra.mxu2 %v860_v2  ;;  %v867_v7 = vld [vmem:[#allocation5 + $0xf0] sm:$0xff]  ;;  %v858_v10 = vld [vmem:[#allocation5 + $0xa8] sm:$0xff] }
  0x18   :  { %416 = vmatpush.bf16.msra.mxu3 %v868_v3  ;;  %v866_v11 = vld [vmem:[#allocation5 + $0xe8] sm:$0xff]  ;;  %v841_v12 = vld [vmem:[#allocation5 + $0x20] sm:$0xff]  ;;  %v840_v16 = vld [vmem:[#allocation5 + $0x18] sm:$0xff] }
  0x19   :  { %375 = vmatpush.bf16.msra.mxu0 %v843_v4  ;;  %v849_v13 = vld [vmem:[#allocation5 + $0x60] sm:$0xff]  ;;  %v848_v17 = vld [vmem:[#allocation5 + $0x58] sm:$0xff]  ;;  %v839_v20 = vld [vmem:[#allocation5 + $0x10] sm:$0xff] }
  0x1a   :  { %389 = vmatpush.bf16.msra.mxu1 %v851_v5  ;;  %v857_v14 = vld [vmem:[#allocation5 + $0xa0] sm:$0xff]  ;;  %v856_v18 = vld [vmem:[#allocation5 + $0x98] sm:$0xff]  ;;  %v847_v21 = vld [vmem:[#allocation5 + $0x50] sm:$0xff] }
  0x1b   :  { %403 = vmatpush.bf16.msra.mxu2 %v859_v6  ;;  %v865_v15 = vld [vmem:[#allocation5 + $0xe0] sm:$0xff]  ;;  %v864_v19 = vld [vmem:[#allocation5 + $0xd8] sm:$0xff]  ;;  %v855_v22 = vld [vmem:[#allocation5 + $0x90] sm:$0xff] }
  0x1c   :  { %417 = vmatpush.bf16.msra.mxu3 %v867_v7  ;;  %v863_v23 = vld [vmem:[#allocation5 + $0xd0] sm:$0xff]  ;;  %v838_v24 = vld [vmem:[#allocation5 + $0x8] sm:$0xff]  ;;  %v837_v28 = vld [vmem:[#allocation5] sm:$0xff] }
  0x1d   :  { %376 = vmatpush.bf16.msra.mxu0 %v842_v8  ;;  %v846_v25 = vld [vmem:[#allocation5 + $0x48] sm:$0xff]  ;;  %v845_v29 = vld [vmem:[#allocation5 + $0x40] sm:$0xff]  ;;  %v835_v33 = vld [vmem:[#allocation2 + $0xc] sm:$0xf0] }
  0x1e   :  { %390 = vmatpush.bf16.msra.mxu1 %v850_v9  ;;  %v854_v26 = vld [vmem:[#allocation5 + $0x88] sm:$0xff]  ;;  %v853_v30 = vld [vmem:[#allocation5 + $0x80] sm:$0xff]  ;;  %v629_v35 = vld [vmem:[#allocation2 + $0x10] sm:$0xf0] }
  0x1f   :  { %404 = vmatpush.bf16.msra.mxu2 %v858_v10  ;;  %v862_v27 = vld [vmem:[#allocation5 + $0xc8] sm:$0xff]  ;;  %v861_v31 = vld [vmem:[#allocation5 + $0xc0] sm:$0xff]  ;;  %v836_v37 = vld [vmem:[#allocation2 + $0x14] sm:$0xf0] }
  0x20   :  { %418 = vmatpush.bf16.msra.mxu3 %v866_v11  ;;  %v627_v32 = vld [vmem:[#allocation2] sm:$0xf]  ;;  %v833_v34 = vld [vmem:[#allocation2 + $0x4] sm:$0xf]  ;;  %v635_v36 = vld [vmem:[#allocation2 + $0x8] sm:$0xf] }
  0x21   :  { %377 = vmatpush.bf16.msra.mxu0 %v841_v12  ;;  %v834_v38 = vld [vmem:[#allocation2 + $0xc] sm:$0xf]  ;;  %v637_v39 = vld [vmem:[#allocation2 + $0x18] sm:$0xf0]  ;;  %v628_v41 = vor.u32 %v835_v33, %v627_v32  ;;  %v632_v42 = vor.u32 %v833_v34, %v629_v35  ;;  %v636_v43 = vor.u32 %v836_v37, %v635_v36  ;;  %v875_v45 = vld [vmem:[#allocation7 + $0x30] sm:$0xff] }
  0x22   :  { %391 = vmatpush.bf16.msra.mxu1 %v849_v13  ;;  %v876_v40 = vld [vmem:[#allocation7 + $0x38] sm:$0xff]  ;;  %v640_v44 = vor.u32 %v834_v38, %v637_v39  ;;  %v874_v46 = vld [vmem:[#allocation7 + $0x28] sm:$0xff]  ;;  %v873_v47 = vld [vmem:[#allocation7 + $0x20] sm:$0xff] }
  0x23   :  { %405 = vmatpush.bf16.msra.mxu2 %v857_v14  ;;  %v872_v48 = vld [vmem:[#allocation7 + $0x18] sm:$0xff]  ;;  %v871_v49 = vld [vmem:[#allocation7 + $0x10] sm:$0xff]  ;;  %v870_v50 = vld [vmem:[#allocation7 + $0x8] sm:$0xff] }
  0x24   :  { %419 = vmatpush.bf16.msra.mxu3 %v865_v15  ;;  %v869_v51 = vld [vmem:[#allocation7] sm:$0xff]  ;;  %v884_v52 = vld [vmem:[#allocation8 + $0x38] sm:$0xff]  ;;  %v883_v53 = vld [vmem:[#allocation8 + $0x30] sm:$0xff] }
  0x25   :  { %378 = vmatpush.bf16.msra.mxu0 %v840_v16  ;;  %v882_v54 = vld [vmem:[#allocation8 + $0x28] sm:$0xff]  ;;  %v899_v55 = vld [vmem:[%s1117_s2] ss:$0 sm:$0xff]  ;;  %v880_v12 = vld [vmem:[#allocation8 + $0x18] sm:$0xff] }
  0x26   :  { %392 = vmatpush.bf16.msra.mxu1 %v848_v17  ;;  %v881_v57 = vld [vmem:[#allocation8 + $0x20] sm:$0xff]  ;;  %v879_v13 = vld [vmem:[#allocation8 + $0x10] sm:$0xff]  ;;  %v878_v14 = vld [vmem:[#allocation8 + $0x8] sm:$0xff] }
  0x27   :  { %406 = vmatpush.bf16.msra.mxu2 %v856_v18  ;;  %v877_v15 = vld [vmem:[#allocation8] sm:$0xff] }
  0x28   :  { %420 = vmatpush.bf16.msra.mxu3 %v864_v19  ;;  %v900_v17 = vld [vmem:[%s1119_s4] ss:$0 sm:$0xff] }
  0x29   :  { %379 = vmatpush.bf16.msra.mxu0 %v839_v20 }
  0x2a   :  { %393 = vmatpush.bf16.msra.mxu1 %v847_v21 }
  0x2b   :  { %407 = vmatpush.bf16.msra.mxu2 %v855_v22 }
  0x2c   :  { %421 = vmatpush.bf16.msra.mxu3 %v863_v23 }
  0x2d   :  { %380 = vmatpush.bf16.msra.mxu0 %v838_v24 }
  0x2e   :  { %394 = vmatpush.bf16.msra.mxu1 %v846_v25  ;;  %v901_v25 = vld [vmem:[%s1121_s6] ss:$0 sm:$0xff] }
  0x2f   :  { %408 = vmatpush.bf16.msra.mxu2 %v854_v26 }
  0x30   :  { %422 = vmatpush.bf16.msra.mxu3 %v862_v27 }
  0x31   :  { %381 = vmatpush.bf16.msra.mxu0 %v837_v28 }
  0x32   :  { %395 = vmatpush.bf16.msra.mxu1 %v845_v29 }
  0x33   :  { %409 = vmatpush.bf16.msra.mxu2 %v853_v30 }
  0x34   :  { %423 = vmatpush.bf16.msra.mxu3 %v861_v31  ;;  %382 = vmatmul.bf16.vlgmr.msra.gmra.mxu0 %v628_v41 }
  0x35   :  { %501 = vmatpush.bf16.msrb.mxu0 %v876_v40  ;;  %396 = vmatmul.bf16.vlgmr.msra.gmra.mxu1 %v632_v42 }
  0x36   :  { %410 = vmatmul.bf16.vlgmr.msra.gmra.mxu2 %v636_v43  ;;  %586 = vmatpush.bf16.msrb.mxu1 %v884_v52 }
  0x37   :  { %424 = vmatmul.bf16.vlgmr.msra.gmra.mxu3 %v640_v44 }
  0x39   :  { %502 = vmatpush.bf16.msrb.mxu0 %v875_v45 }
  0x3a   :  { %587 = vmatpush.bf16.msrb.mxu1 %v883_v53 }
  0x3d   :  { %503 = vmatpush.bf16.msrb.mxu0 %v874_v46 }
  0x3e   :  { %588 = vmatpush.bf16.msrb.mxu1 %v882_v54 }
  0x41   :  { %504 = vmatpush.bf16.msrb.mxu0 %v873_v47 }
  0x42   :  { %589 = vmatpush.bf16.msrb.mxu1 %v881_v57 }
  0x45   :  { %505 = vmatpush.bf16.msrb.mxu0 %v872_v48 }
  0x46   :  { %590 = vmatpush.bf16.msrb.mxu1 %v880_v12 }
  0x49   :  { %506 = vmatpush.bf16.msrb.mxu0 %v871_v49 }
  0x4a   :  { %591 = vmatpush.bf16.msrb.mxu1 %v879_v13 }
  0x4d   :  { %507 = vmatpush.bf16.msrb.mxu0 %v870_v50 }
  0x4e   :  { %592 = vmatpush.bf16.msrb.mxu1 %v878_v14 }
  0x51   :  { %508 = vmatpush.bf16.msrb.mxu0 %v869_v51 }
  0x52   :  { %593 = vmatpush.bf16.msrb.mxu1 %v877_v15 }
  0xb1   :  { %v383_v56 = vpop.f32.mrf.mxu0 }
  0xb2   :  { %v397_v58 = vpop.f32.mrf.mxu1  ;;  %v384_v59 = vadd.f32 %v899_v55, %v383_v56 }
  0xb4   :  { %v398_v62 = vadd.f32 %v397_v58, %v384_v59 }
  0xb9   :  { %v411_v60 = vpop.f32.mrf.mxu2  ;;  %v385_v63 = vpop.f32.mrf.mxu0 }
  0xba   :  { %v425_v61 = vpop.f32.mrf.mxu3  ;;  %v386_v0 = vadd.f32 %v899_v55, %v385_v63  ;;  %v412_v1 = vadd.f32 %v411_v60, %v398_v62  ;;  %v399_v2 = vpop.f32.mrf.mxu1 }
  0xbc   :  { %v400_v3 = vadd.f32 %v399_v2, %v386_v0  ;;  %v426_v5 = vadd.f32 %v425_v61, %v412_v1 }
  0xbe   :  { %v430_v9 = vmax.f32 %v426_v5, 0.0 }
  0xc1   :  { %v413_v4 = vpop.f32.mrf.mxu2 }
  0xc2   :  { %v414_v6 = vadd.f32 %v413_v4, %v400_v3  ;;  %v427_v7 = vpop.f32.mrf.mxu3 }
  0xc4   :  { %v428_v8 = vadd.f32 %v427_v7, %v414_v6 }
  0xc6   :  { %v431_v10 = vmax.f32 %v428_v8, 0.0 }
  0xc8   :  { %v432_v11 = vpack.c.bf16 %v431_v10, %v430_v9 }
  0xca   :  { %509 = vmatmul.bf16.vlgmr.msrb.gmra.mxu0 %v432_v11 }
 0x147   :  { %v510_v16 = vpop.f32.mrf.mxu0 }
 0x148   :  { %v511_v18 = vadd.f32 %v900_v17, %v510_v16 }
 0x14a   :  { %v515_v21 = vmax.f32 %v511_v18, 0.0 }
 0x14f   :  { %v512_v19 = vpop.f32.mrf.mxu0 }
 0x150   :  { %v513_v20 = vadd.f32 %v900_v17, %v512_v19 }
 0x152   :  { %v516_v22 = vmax.f32 %v513_v20, 0.0 }
 0x154   :  { %v517_v23 = vpack.c.bf16 %v516_v22, %v515_v21 }
 0x156   :  { %594 = vmatmul.bf16.vlgmr.msrb.gmra.mxu1 %v517_v23 }
 0x1d3   :  { %v595_v24 = vpop.f32.mrf.mxu1 }
 0x1d4   :  { %v596_v27 = vadd.f32 %v901_v25, %v595_v24 }
 0x1db   :  { %v597_v26 = vpop.f32.mrf.mxu1 }
 0x1dc   :  { %v598_v28 = vadd.f32 %v901_v25, %v597_v26 }
 0x1de   :  { %v888_v29 = vpack.c.bf16 %v598_v28, %v596_v27 }
 0x1e0   :  { %889 = vst [vmem:[#allocation10] sm:$0xff] %v888_v29  }
 0x1e1   :  { %616 = dma.vmem_to_hbm [thread:$0]  %s609_s27, 128, %s611_s30, [#allocation4], %s1031_s9, %s1031_s9, %s1032_s10  }
 0x1e2   :  { %1028 = dma.done.wait [#allocation4], 128  }
 0x1e3   :  { %1029 = vsyncadd [#allocation4], 4294967168 }
 0x1e4   :  { %621 = vsyncpa [#allocation3], 1 }
 0x1e5   :  { %622 = vsyncpa [#allocation6], 1 }
 0x1e6   :  { %623 = vsyncpa [#allocation9], 1 }
 0x1e7   :  { %624 = vsyncpa [#allocation4], 1 }

// kernel: tpu_custom_call.1
= control target key start
LH: loop header
LB: loop body
LE: loop exit
PB: predicated region body
PF: predicated region fallthrough
CT: control target
= control target key end

     0   :  { %12 = vsyncpa [#allocation3], 0  ;;  %s1115_s0 = inlined_call_operand.hbm [shape: bf16[16,512], index: 0, kind: input, shape index: {}]   ;;  %s1116_s1 = inlined_call_operand.hbm [shape: bf16[512,128], index: 1, kind: input, shape index: {}]   ;;  %s1117_s2 = inlined_call_operand.vmem [shape: f32[1,128], index: 2, kind: input, shape index: {}]   ;;  %s1118_s3 = inlined_call_operand.hbm [shape: bf16[128,128], index: 3, kind: input, shape index: {}]   ;;  %s1119_s4 = inlined_call_operand.vmem [shape: f32[1,128], index: 4, kind: input, shape index: {}]   ;;  %s1120_s5 = inlined_call_operand.hbm [shape: bf16[128,128], index: 5, kind: input, shape index: {}]   ;;  %s1121_s6 = inlined_call_operand.vmem [shape: f32[1,128], index: 6, kind: input, shape index: {}]   ;;  %s1122_s7 = inlined_call_operand.hbm [shape: bf16[16,128], index: 7, kind: output, shape index: {}]  }
   0x1   :  { %13 = vsyncpa [#allocation6], 0 }
   0x2   :  { %14 = vsyncpa [#allocation9], 0  ;;  %s33_s26 = sshll.u32 %s1116_s1, 4  ;;  %s34_s26 = int_to_ptr.hbm [resolvable:$true] %s33_s26 }
   0x3   :  { %15 = vsyncpa [#allocation4], 0  ;;  %s1030_s27 = smov [#allocation5]   ;;  %s20_s8 = sshll.u32 %s1115_s0, 4  ;;  %s21_s8 = int_to_ptr.hbm [resolvable:$true] %s20_s8 }
   0x4   :  { %s35_s28 = sshll.u32 %s1030_s27, 4  ;;  %s1031_s9 = smov 64   ;;  %s36_s28 = int_to_ptr.vmem [resolvable:$true] %s35_s28 }
   0x5   :  { %s1032_s10 = smov 4   ;;  %s1033_s11 = smov [#allocation2]  }
   0x6   :  { %41 = dma.hbm_to_vmem [thread:$0]  %s34_s26, 4096, %s36_s28, [#allocation6], %s1031_s9, %s1031_s9, %s1032_s10  }
   0x7   :  { %s22_s12 = sshll.u32 %s1033_s11, 4  ;;  %s1034_s1 = smov 256   ;;  %s23_s12 = int_to_ptr.vmem [resolvable:$true] %s22_s12 }
   0x8   :  { %s1035_s13 = smov 16   ;;  %s48_s16 = sshll.u32 %s1118_s3, 4  ;;  %s49_s16 = int_to_ptr.hbm [resolvable:$true] %s48_s16 }
   0x9   :  { %28 = dma.hbm_to_vmem [thread:$0]  %s21_s8, 512, %s23_s12, [#allocation3], %s1034_s1, %s1034_s1, %s1035_s13  }
   0xa   :  { %s1036_s17 = smov [#allocation7]   ;;  %s63_s20 = sshll.u32 %s1120_s5, 4  ;;  %s64_s20 = int_to_ptr.hbm [resolvable:$true] %s63_s20 }
   0xb   :  { %s50_s0 = sshll.u32 %s1036_s17, 4  ;;  %s1037_s21 = smov [#allocation8]   ;;  %s51_s0 = int_to_ptr.vmem [resolvable:$true] %s50_s0 }
   0xc   :  { %56 = dma.hbm_to_vmem [thread:$0]  %s49_s16, 1024, %s51_s0, [#allocation6], %s1031_s9, %s1031_s9, %s1032_s10  }
   0xd   :  { %s65_s22 = sshll.u32 %s1037_s21, 4  ;;  %s66_s22 = int_to_ptr.vmem [resolvable:$true] %s65_s22 }
   0xe   :  { %71 = dma.hbm_to_vmem [thread:$0]  %s64_s20, 1024, %s66_s22, [#allocation9], %s1031_s9, %s1031_s9, %s1032_s10  }
   0xf   :  { %1022 = dma.done.wait [#allocation3], 512  }
  0x10   :  { %1023 = vsyncadd [#allocation3], 4294966784 }
  0x11   :  { %1024 = dma.done.wait [#allocation6], 5120  }
  0x12   :  { %1025 = vsyncadd [#allocation6], 4294962176 }
  0x13   :  { %1026 = dma.done.wait [#allocation9], 1024  }
  0x14   :  { %1027 = vsyncadd [#allocation9], 4294966272  ;;  %v844_v0 = vld [vmem:[#allocation5 + $0x38] sm:$0xff]  ;;  %v843_v4 = vld [vmem:[#allocation5 + $0x30] sm:$0xff]  ;;  %s1038_s26 = smov [#allocation10]   ;;  %s610_s30 = sshll.u32 %s1122_s7, 4  ;;  %s611_s30 = int_to_ptr.hbm [resolvable:$true] %s610_s30 }
  0x15   :  { %v852_v1 = vld [vmem:[#allocation5 + $0x78] sm:$0xff]  ;;  %374 = vmatpush.bf16.msra.mxu0 %v844_v0  ;;  %v851_v5 = vld [vmem:[#allocation5 + $0x70] sm:$0xff]  ;;  %v842_v8 = vld [vmem:[#allocation5 + $0x28] sm:$0xff]  ;;  %s608_s27 = sshll.u32 %s1038_s26, 4  ;;  %s609_s27 = int_to_ptr.vmem [resolvable:$true] %s608_s27 }
  0x16   :  { %v860_v2 = vld [vmem:[#allocation5 + $0xb8] sm:$0xff]  ;;  %388 = vmatpush.bf16.msra.mxu1 %v852_v1  ;;  %v859_v6 = vld [vmem:[#allocation5 + $0xb0] sm:$0xff]  ;;  %v850_v9 = vld [vmem:[#allocation5 + $0x68] sm:$0xff] }
  0x17   :  { %v868_v3 = vld [vmem:[#allocation5 + $0xf8] sm:$0xff]  ;;  %402 = vmatpush.bf16.msra.mxu2 %v860_v2  ;;  %v867_v7 = vld [vmem:[#allocation5 + $0xf0] sm:$0xff]  ;;  %v858_v10 = vld [vmem:[#allocation5 + $0xa8] sm:$0xff] }
  0x18   :  { %416 = vmatpush.bf16.msra.mxu3 %v868_v3  ;;  %v866_v11 = vld [vmem:[#allocation5 + $0xe8] sm:$0xff]  ;;  %v841_v12 = vld [vmem:[#allocation5 + $0x20] sm:$0xff]  ;;  %v840_v16 = vld [vmem:[#allocation5 + $0x18] sm:$0xff] }
  0x19   :  { %375 = vmatpush.bf16.msra.mxu0 %v843_v4  ;;  %v849_v13 = vld [vmem:[#allocation5 + $0x60] sm:$0xff]  ;;  %v848_v17 = vld [vmem:[#allocation5 + $0x58] sm:$0xff]  ;;  %v839_v20 = vld [vmem:[#allocation5 + $0x10] sm:$0xff] }
  0x1a   :  { %389 = vmatpush.bf16.msra.mxu1 %v851_v5  ;;  %v857_v14 = vld [vmem:[#allocation5 + $0xa0] sm:$0xff]  ;;  %v856_v18 = vld [vmem:[#allocation5 + $0x98] sm:$0xff]  ;;  %v847_v21 = vld [vmem:[#allocation5 + $0x50] sm:$0xff] }
  0x1b   :  { %403 = vmatpush.bf16.msra.mxu2 %v859_v6  ;;  %v865_v15 = vld [vmem:[#allocation5 + $0xe0] sm:$0xff]  ;;  %v864_v19 = vld [vmem:[#allocation5 + $0xd8] sm:$0xff]  ;;  %v855_v22 = vld [vmem:[#allocation5 + $0x90] sm:$0xff] }
  0x1c   :  { %417 = vmatpush.bf16.msra.mxu3 %v867_v7  ;;  %v863_v23 = vld [vmem:[#allocation5 + $0xd0] sm:$0xff]  ;;  %v838_v24 = vld [vmem:[#allocation5 + $0x8] sm:$0xff]  ;;  %v837_v28 = vld [vmem:[#allocation5] sm:$0xff] }
  0x1d   :  { %376 = vmatpush.bf16.msra.mxu0 %v842_v8  ;;  %v846_v25 = vld [vmem:[#allocation5 + $0x48] sm:$0xff]  ;;  %v845_v29 = vld [vmem:[#allocation5 + $0x40] sm:$0xff]  ;;  %v835_v33 = vld [vmem:[#allocation2 + $0xc] sm:$0xf0] }
  0x1e   :  { %390 = vmatpush.bf16.msra.mxu1 %v850_v9  ;;  %v854_v26 = vld [vmem:[#allocation5 + $0x88] sm:$0xff]  ;;  %v853_v30 = vld [vmem:[#allocation5 + $0x80] sm:$0xff]  ;;  %v629_v35 = vld [vmem:[#allocation2 + $0x10] sm:$0xf0] }
  0x1f   :  { %404 = vmatpush.bf16.msra.mxu2 %v858_v10  ;;  %v862_v27 = vld [vmem:[#allocation5 + $0xc8] sm:$0xff]  ;;  %v861_v31 = vld [vmem:[#allocation5 + $0xc0] sm:$0xff]  ;;  %v836_v37 = vld [vmem:[#allocation2 + $0x14] sm:$0xf0] }
  0x20   :  { %418 = vmatpush.bf16.msra.mxu3 %v866_v11  ;;  %v627_v32 = vld [vmem:[#allocation2] sm:$0xf]  ;;  %v833_v34 = vld [vmem:[#allocation2 + $0x4] sm:$0xf]  ;;  %v635_v36 = vld [vmem:[#allocation2 + $0x8] sm:$0xf] }
  0x21   :  { %377 = vmatpush.bf16.msra.mxu0 %v841_v12  ;;  %v834_v38 = vld [vmem:[#allocation2 + $0xc] sm:$0xf]  ;;  %v637_v39 = vld [vmem:[#allocation2 + $0x18] sm:$0xf0]  ;;  %v628_v41 = vor.u32 %v835_v33, %v627_v32  ;;  %v632_v42 = vor.u32 %v833_v34, %v629_v35  ;;  %v636_v43 = vor.u32 %v836_v37, %v635_v36  ;;  %v875_v45 = vld [vmem:[#allocation7 + $0x30] sm:$0xff] }
  0x22   :  { %391 = vmatpush.bf16.msra.mxu1 %v849_v13  ;;  %v876_v40 = vld [vmem:[#allocation7 + $0x38] sm:$0xff]  ;;  %v640_v44 = vor.u32 %v834_v38, %v637_v39  ;;  %v874_v46 = vld [vmem:[#allocation7 + $0x28] sm:$0xff]  ;;  %v873_v47 = vld [vmem:[#allocation7 + $0x20] sm:$0xff] }
  0x23   :  { %405 = vmatpush.bf16.msra.mxu2 %v857_v14  ;;  %v872_v48 = vld [vmem:[#allocation7 + $0x18] sm:$0xff]  ;;  %v871_v49 = vld [vmem:[#allocation7 + $0x10] sm:$0xff]  ;;  %v870_v50 = vld [vmem:[#allocation7 + $0x8] sm:$0xff] }
  0x24   :  { %419 = vmatpush.bf16.msra.mxu3 %v865_v15  ;;  %v869_v51 = vld [vmem:[#allocation7] sm:$0xff]  ;;  %v884_v52 = vld [vmem:[#allocation8 + $0x38] sm:$0xff]  ;;  %v883_v53 = vld [vmem:[#allocation8 + $0x30] sm:$0xff] }
  0x25   :  { %378 = vmatpush.bf16.msra.mxu0 %v840_v16  ;;  %v882_v54 = vld [vmem:[#allocation8 + $0x28] sm:$0xff]  ;;  %v899_v55 = vld [vmem:[%s1117_s2] ss:$0 sm:$0xff]  ;;  %v880_v12 = vld [vmem:[#allocation8 + $0x18] sm:$0xff] }
  0x26   :  { %392 = vmatpush.bf16.msra.mxu1 %v848_v17  ;;  %v881_v57 = vld [vmem:[#allocation8 + $0x20] sm:$0xff]  ;;  %v879_v13 = vld [vmem:[#allocation8 + $0x10] sm:$0xff]  ;;  %v878_v14 = vld [vmem:[#allocation8 + $0x8] sm:$0xff] }
  0x27   :  { %406 = vmatpush.bf16.msra.mxu2 %v856_v18  ;;  %v877_v15 = vld [vmem:[#allocation8] sm:$0xff] }
  0x28   :  { %420 = vmatpush.bf16.msra.mxu3 %v864_v19  ;;  %v900_v17 = vld [vmem:[%s1119_s4] ss:$0 sm:$0xff] }
  0x29   :  { %379 = vmatpush.bf16.msra.mxu0 %v839_v20 }
  0x2a   :  { %393 = vmatpush.bf16.msra.mxu1 %v847_v21 }
  0x2b   :  { %407 = vmatpush.bf16.msra.mxu2 %v855_v22 }
  0x2c   :  { %421 = vmatpush.bf16.msra.mxu3 %v863_v23 }
  0x2d   :  { %380 = vmatpush.bf16.msra.mxu0 %v838_v24 }
  0x2e   :  { %394 = vmatpush.bf16.msra.mxu1 %v846_v25  ;;  %v901_v25 = vld [vmem:[%s1121_s6] ss:$0 sm:$0xff] }
  0x2f   :  { %408 = vmatpush.bf16.msra.mxu2 %v854_v26 }
  0x30   :  { %422 = vmatpush.bf16.msra.mxu3 %v862_v27 }
  0x31   :  { %381 = vmatpush.bf16.msra.mxu0 %v837_v28 }
  0x32   :  { %395 = vmatpush.bf16.msra.mxu1 %v845_v29 }
  0x33   :  { %409 = vmatpush.bf16.msra.mxu2 %v853_v30 }
  0x34   :  { %423 = vmatpush.bf16.msra.mxu3 %v861_v31  ;;  %382 = vmatmul.bf16.vlgmr.msra.gmra.mxu0 %v628_v41 }
  0x35   :  { %501 = vmatpush.bf16.msrb.mxu0 %v876_v40  ;;  %396 = vmatmul.bf16.vlgmr.msra.gmra.mxu1 %v632_v42 }
  0x36   :  { %410 = vmatmul.bf16.vlgmr.msra.gmra.mxu2 %v636_v43  ;;  %586 = vmatpush.bf16.msrb.mxu1 %v884_v52 }
  0x37   :  { %424 = vmatmul.bf16.vlgmr.msra.gmra.mxu3 %v640_v44 }
  0x39   :  { %502 = vmatpush.bf16.msrb.mxu0 %v875_v45 }
  0x3a   :  { %587 = vmatpush.bf16.msrb.mxu1 %v883_v53 }
  0x3d   :  { %503 = vmatpush.bf16.msrb.mxu0 %v874_v46 }
  0x3e   :  { %588 = vmatpush.bf16.msrb.mxu1 %v882_v54 }
  0x41   :  { %504 = vmatpush.bf16.msrb.mxu0 %v873_v47 }
  0x42   :  { %589 = vmatpush.bf16.msrb.mxu1 %v881_v57 }
  0x45   :  { %505 = vmatpush.bf16.msrb.mxu0 %v872_v48 }
  0x46   :  { %590 = vmatpush.bf16.msrb.mxu1 %v880_v12 }
  0x49   :  { %506 = vmatpush.bf16.msrb.mxu0 %v871_v49 }
  0x4a   :  { %591 = vmatpush.bf16.msrb.mxu1 %v879_v13 }
  0x4d   :  { %507 = vmatpush.bf16.msrb.mxu0 %v870_v50 }
  0x4e   :  { %592 = vmatpush.bf16.msrb.mxu1 %v878_v14 }
  0x51   :  { %508 = vmatpush.bf16.msrb.mxu0 %v869_v51 }
  0x52   :  { %593 = vmatpush.bf16.msrb.mxu1 %v877_v15 }
  0xb1   :  { %v383_v56 = vpop.f32.mrf.mxu0 }
  0xb2   :  { %v397_v58 = vpop.f32.mrf.mxu1  ;;  %v384_v59 = vadd.f32 %v899_v55, %v383_v56 }
  0xb4   :  { %v398_v62 = vadd.f32 %v397_v58, %v384_v59 }
  0xb9   :  { %v411_v60 = vpop.f32.mrf.mxu2  ;;  %v385_v63 = vpop.f32.mrf.mxu0 }
  0xba   :  { %v425_v61 = vpop.f32.mrf.mxu3  ;;  %v386_v0 = vadd.f32 %v899_v55, %v385_v63  ;;  %v412_v1 = vadd.f32 %v411_v60, %v398_v62  ;;  %v399_v2 = vpop.f32.mrf.mxu1 }
  0xbc   :  { %v400_v3 = vadd.f32 %v399_v2, %v386_v0  ;;  %v426_v5 = vadd.f32 %v425_v61, %v412_v1 }
  0xbe   :  { %v430_v9 = vmax.f32 %v426_v5, 0.0 }
  0xc1   :  { %v413_v4 = vpop.f32.mrf.mxu2 }
  0xc2   :  { %v414_v6 = vadd.f32 %v413_v4, %v400_v3  ;;  %v427_v7 = vpop.f32.mrf.mxu3 }
  0xc4   :  { %v428_v8 = vadd.f32 %v427_v7, %v414_v6 }
  0xc6   :  { %v431_v10 = vmax.f32 %v428_v8, 0.0 }
  0xc8   :  { %v432_v11 = vpack.c.bf16 %v431_v10, %v430_v9 }
  0xca   :  { %509 = vmatmul.bf16.vlgmr.msrb.gmra.mxu0 %v432_v11 }
 0x147   :  { %v510_v16 = vpop.f32.mrf.mxu0 }
 0x148   :  { %v511_v18 = vadd.f32 %v900_v17, %v510_v16 }
 0x14a   :  { %v515_v21 = vmax.f32 %v511_v18, 0.0 }
 0x14f   :  { %v512_v19 = vpop.f32.mrf.mxu0 }
 0x150   :  { %v513_v20 = vadd.f32 %v900_v17, %v512_v19 }
 0x152   :  { %v516_v22 = vmax.f32 %v513_v20, 0.0 }
 0x154   :  { %v517_v23 = vpack.c.bf16 %v516_v22, %v515_v21 }
 0x156   :  { %594 = vmatmul.bf16.vlgmr.msrb.gmra.mxu1 %v517_v23 }
 0x1d3   :  { %v595_v24 = vpop.f32.mrf.mxu1 }
 0x1d4   :  { %v596_v27 = vadd.f32 %v901_v25, %v595_v24 }
 0x1db   :  { %v597_v26 = vpop.f32.mrf.mxu1 }
 0x1dc   :  { %v598_v28 = vadd.f32 %v901_v25, %v597_v26 }
 0x1de   :  { %v888_v29 = vpack.c.bf16 %v598_v28, %v596_v27 }
 0x1e0   :  { %889 = vst [vmem:[#allocation10] sm:$0xff] %v888_v29  }
 0x1e1   :  { %616 = dma.vmem_to_hbm [thread:$0]  %s609_s27, 128, %s611_s30, [#allocation4], %s1031_s9, %s1031_s9, %s1032_s10  }
 0x1e2   :  { %1028 = dma.done.wait [#allocation4], 128  }
 0x1e3   :  { %1029 = vsyncadd [#allocation4], 4294967168 }
 0x1e4   :  { %621 = vsyncpa [#allocation3], 1 }
 0x1e5   :  { %622 = vsyncpa [#allocation6], 1 }
 0x1e6   :  { %623 = vsyncpa [#allocation9], 1 }
 0x1e7   :  { %624 = vsyncpa [#allocation4], 1 }

</bundles_post_ra>
